<compile_context>
chip_gen: v7x
topology: tpu7x:2x2x1
jax: 0.10.0
libtpu: 0.0.40
codegen_flags: <defaults>
</compile_context>

<pallas_src>
import functools

import jax
import jax.numpy as jnp
from jax import lax
from jax.experimental import pallas as pl
from jax.experimental.pallas import tpu as pltpu


def _im2col_into(src, patch_ref, width):
    """Scatter the 9 shifted 3x3 taps of `src` into the im2col patch scratch.

    src       : (C, L) value, L = H*W flattened row-major (p = h*W + w).
    patch_ref : (9*C, L) VMEM scratch; row block t = kh*3 + kw holds the tap
                src[c, h+kh-1, w+kw-1] (zero outside the image).
    width     : static image width W.

    Every element of patch_ref is overwritten each call, so no init is needed
    and the scratch is safe under "parallel" megacore sharding.
    """
    src = src.astype(patch_ref.dtype)
    C, L = src.shape
    W = width

    # Lane coordinate w = p % W.  Pre-mask the *source* so horizontally
    # shifted taps never read across a row boundary:
    #   dw = +1 taps would wrap in column 0 of the next row  -> zero w == 0
    #   dw = -1 taps would wrap in column W-1 of the prev row -> zero w == W-1
    lane_w = lax.broadcasted_iota(jnp.int32, (C, L), 1) % W
    src_zl = jnp.where(lane_w == 0, jnp.zeros_like(src), src)      # for dw = +1
    src_zr = jnp.where(lane_w == W - 1, jnp.zeros_like(src), src)  # for dw = -1
    pick = {0: src_zr, 1: src, 2: src_zl}

    for kh in range(3):
        for kw in range(3):
            s = (kh - 1) * W + (kw - 1)          # flat shift for this tap
            v = pick[kw]
            r0 = (kh * 3 + kw) * C
            if s == 0:
                patch_ref[r0:r0 + C, :] = v
            elif s > 0:
                # out[p] = src[p + s]; top/bottom image border zeros come from
                # the end strip, row-wrap handled by the source pre-mask.
                patch_ref[r0:r0 + C, :L - s] = v[:, s:]
                patch_ref[r0:r0 + C, L - s:] = jnp.zeros((C, s), v.dtype)
            else:
                k = -s
                patch_ref[r0:r0 + C, :k] = jnp.zeros((C, k), v.dtype)
                patch_ref[r0:r0 + C, k:] = v[:, :L - k]


def rb_kernel(x_ref, w1_ref, b1_ref, w2_ref, b2_ref, out_ref,
              patch1_ref, patch2_ref, *, width):
    """One batch element per grid step (batch axis marked "parallel").

    x_ref      : (1, Cin, H*W)    input, flattened NCHW (lane-dense)
    w1_ref     : (Cmid, 9*Cin)    conv1 weights, columns ordered (kh, kw, ci)
    b1_ref     : (Cmid, 1)
    w2_ref     : (Cin, 9*Cmid)    conv2 weights, columns ordered (kh, kw, cm)
    b2_ref     : (Cin, 1)
    out_ref    : (1, Cin, H*W)    output, flattened NCHW (lane-dense)
    patch1_ref : VMEM (9*Cin,  H*W) im2col scratch for conv1
    patch2_ref : VMEM (9*Cmid, H*W) im2col scratch for conv2
    """
    x = x_ref[0]                                           # (Cin, L) f32

    # ---- conv1: single MXU matmul (K = 9*Cin) + bias + ReLU ----
    _im2col_into(x, patch1_ref, width)
    h = jnp.dot(w1_ref[...], patch1_ref[...],
                preferred_element_type=jnp.float32)        # (Cmid, L) f32
    h = jnp.maximum(h + b1_ref[...], 0.0)

    # ---- conv2: single MXU matmul (K = 9*Cmid) + bias, then residual ----
    _im2col_into(h, patch2_ref, width)
    y = jnp.dot(w2_ref[...], patch2_ref[...],
                preferred_element_type=jnp.float32)        # (Cin, L) f32
    y = y + b2_ref[...] + x
    out_ref[0] = y.astype(out_ref.dtype)


@functools.partial(jax.jit, static_argnames=("compute_dtype",))
def rb_forward(x, w1, b1, w2, b2, *, compute_dtype=jnp.float32):
    """RB forward pass.

    x  : (N, Cin, H, W) float32, NCHW (PyTorch layout)
    w1 : (Cmid, Cin, 3, 3) OIHW;  b1 : (Cmid,)
    w2 : (Cin, Cmid, 3, 3) OIHW;  b2 : (Cin,)

    compute_dtype: dtype of the MXU matmul operands.  jnp.bfloat16 doubles the
    MXU rate on v5e/v6e/v7x (accumulation stays f32); the f32 default keeps
    exact (<=1e-4) parity with the PyTorch module.  Elementwise math (bias,
    ReLU, residual) always stays in f32.
    """
    N, Cin, H, W = x.shape
    Cmid = w1.shape[0]
    L = H * W

    # Free reshape: last dim L is a multiple of 128 -> lane-dense loads/stores.
    x_flat = x.reshape(N, Cin, L)

    # Repack OIHW conv weights into im2col matrices (O, kh*kw*I), matching the
    # (kh, kw, ci) row order produced by _im2col_into.
    w1_mat = jnp.transpose(w1, (0, 2, 3, 1)).reshape(Cmid, 9 * Cin).astype(compute_dtype)
    w2_mat = jnp.transpose(w2, (0, 2, 3, 1)).reshape(Cin, 9 * Cmid).astype(compute_dtype)
    b1_col = b1.reshape(Cmid, 1).astype(jnp.float32)
    b2_col = b2.reshape(Cin, 1).astype(jnp.float32)

    kernel = functools.partial(rb_kernel, width=W)

    # TODO(synk): for large images / channel counts add an H-row tiling grid
    # axis with a 1-row halo so the im2col scratches stay inside v7x's 64 MiB
    # VMEM; at these shapes a whole image per step fits with large margin.
    out_flat = pl.pallas_call(
        kernel,
        out_shape=jax.ShapeDtypeStruct((N, Cin, L), x.dtype),
        grid_spec=pltpu.PrefetchScalarGridSpec(
            num_scalar_prefetch=0,
            grid=(N,),
            in_specs=[
                pl.BlockSpec((1, Cin, L), lambda n: (n, 0, 0)),
                pl.BlockSpec((Cmid, 9 * Cin), lambda n: (0, 0)),
                pl.BlockSpec((Cmid, 1), lambda n: (0, 0)),
                pl.BlockSpec((Cin, 9 * Cmid), lambda n: (0, 0)),
                pl.BlockSpec((Cin, 1), lambda n: (0, 0)),
            ],
            out_specs=pl.BlockSpec((1, Cin, L), lambda n: (n, 0, 0)),
            scratch_shapes=[
                pltpu.VMEM((9 * Cin, L), compute_dtype),
                pltpu.VMEM((9 * Cmid, L), compute_dtype),
            ],
        ),
        compiler_params=pltpu.CompilerParams(
            # Batch elements are independent -> shard the grid across v7x's
            # 2 TensorCores; harmless on single-TC v5e/v6e.
            dimension_semantics=("parallel",),
            # Raised scoped-VMEM limit (safe on v5e/v6e/v7x; usage here ~1 MiB).
            vmem_limit_bytes=64 * 1024 * 1024,
        ),
    )(x_flat, w1_mat, b1_col, w2_mat, b2_col)

    return out_flat.reshape(N, Cin, H, W)


def rb_reference(x, w1, b1, w2, b2):
    """Pure-JAX reference matching PyTorch Conv2d semantics (NCHW / OIHW)."""
    dn = ("NCHW", "OIHW", "NCHW")
    h = lax.conv_general_dilated(x, w1, (1, 1), "SAME", dimension_numbers=dn)
    h = jnp.maximum(h + b1.reshape(1, -1, 1, 1), 0.0)
    y = lax.conv_general_dilated(h, w2, (1, 1), "SAME", dimension_numbers=dn)
    return y + b2.reshape(1, -1, 1, 1) + x


if __name__ == "__main__":
    # Small shapes consistent with the module: batch=2, n_feat=4, factor=2, 16x16.
    N, n_feat, factor, H, W = 2, 4, 2, 16, 16
    Cin, Cmid = n_feat, n_feat * factor

    key = jax.random.PRNGKey(0)
    kx, kw1, kb1, kw2, kb2 = jax.random.split(key, 5)

    # Deterministic "PyTorch-like" init (uniform(-bound, bound), bound=1/sqrt(fan_in)).
    bound1 = 1.0 / (Cin * 9) ** 0.5
    bound2 = 1.0 / (Cmid * 9) ** 0.5
    w1 = jax.random.uniform(kw1, (Cmid, Cin, 3, 3), jnp.float32, -bound1, bound1)
    b1 = jax.random.uniform(kb1, (Cmid,), jnp.float32, -bound1, bound1)
    w2 = jax.random.uniform(kw2, (Cin, Cmid, 3, 3), jnp.float32, -bound2, bound2)
    b2 = jax.random.uniform(kb2, (Cin,), jnp.float32, -bound2, bound2)

    # PyTorch-layout input: NCHW.
    x = jax.random.normal(kx, (N, Cin, H, W), jnp.float32)

    out = rb_forward(x, w1, b1, w2, b2)
    out = jax.block_until_ready(out)

    ref = rb_reference(x, w1, b1, w2, b2)
    assert out.shape == (N, Cin, H, W)
    err = jnp.max(jnp.abs(out - ref))
    assert jnp.allclose(out, ref, atol=1e-4, rtol=1e-4), f"max abs err {err}"

    print("KERNEL_OK")
</pallas_src>

<mosaic_0001>
module attributes {stable_mosaic.version = 11 : i64} {
  func.func @rb_kernel(%arg0: i32, %arg1: memref<1x4x256xf32, #tpu.memory_space<vmem>>, %arg2: memref<8x36xf32, #tpu.memory_space<vmem>>, %arg3: memref<8x1xf32, #tpu.memory_space<vmem>>, %arg4: memref<4x72xf32, #tpu.memory_space<vmem>>, %arg5: memref<4x1xf32, #tpu.memory_space<vmem>>, %arg6: memref<1x4x256xf32, #tpu.memory_space<vmem>>, %arg7: memref<36x256xf32, #tpu.memory_space<vmem>>, %arg8: memref<72x256xf32, #tpu.memory_space<vmem>>) attributes {dimension_semantics = [#tpu.dimension_semantics<parallel>], iteration_bounds = array<i64: 2>, scalar_prefetch = 0 : i64, scratch_operands = 2 : i64, tpu.core_type = #tpu.core_type<tc>, window_params = [{transform_indices = @transform_0, window_bounds = array<i64: 1, 4, 256>}, {pipeline_mode = #tpu.pipeline_mode<synchronous>, transform_indices = @transform_1, window_bounds = array<i64: 8, 36>}, {pipeline_mode = #tpu.pipeline_mode<synchronous>, transform_indices = @transform_2, window_bounds = array<i64: 8, 1>}, {pipeline_mode = #tpu.pipeline_mode<synchronous>, transform_indices = @transform_3, window_bounds = array<i64: 4, 72>}, {pipeline_mode = #tpu.pipeline_mode<synchronous>, transform_indices = @transform_4, window_bounds = array<i64: 4, 1>}, {transform_indices = @transform_5, window_bounds = array<i64: 1, 4, 256>}]} {
    %c0 = arith.constant 0 : index
    %c0_0 = arith.constant 0 : index
    %c0_1 = arith.constant 0 : index
    %0 = vector.load %arg1[%c0, %c0_0, %c0_1] : memref<1x4x256xf32, #tpu.memory_space<vmem>>, vector<1x4x256xf32>
    %1 = vector.shape_cast %0 : vector<1x4x256xf32> to vector<4x256xf32>
    %2 = tpu.iota {dimensions = array<i32: 1>} : vector<4x256xi32>
    %c16_i32 = arith.constant 16 : i32
    %c0_i32 = arith.constant 0 : i32
    %3 = arith.cmpi eq, %c16_i32, %c0_i32 : i32
    %c1_i32 = arith.constant 1 : i32
    %4 = arith.select %3, %c1_i32, %c16_i32 : i32
    %5 = vector.broadcast %4 : i32 to vector<4x256xi32>
    %6 = arith.remsi %2, %5 : vector<4x256xi32>
    %c0_i32_2 = arith.constant 0 : i32
    %7 = vector.broadcast %c0_i32_2 : i32 to vector<4x256xi32>
    %8 = arith.cmpi ne, %6, %7 : vector<4x256xi32>
    %c0_i32_3 = arith.constant 0 : i32
    %9 = vector.broadcast %c0_i32_3 : i32 to vector<4x256xi32>
    %10 = arith.cmpi slt, %6, %9 : vector<4x256xi32>
    %c0_i32_4 = arith.constant 0 : i32
    %11 = arith.cmpi slt, %4, %c0_i32_4 : i32
    %12 = vector.broadcast %11 : i1 to vector<4x256xi1>
    %13 = vector.broadcast %12 : vector<4x256xi1> to vector<4x256xi1>
    %14 = arith.xori %10, %13 : vector<4x256xi1>
    %15 = arith.andi %14, %8 : vector<4x256xi1>
    %16 = vector.broadcast %4 : i32 to vector<4x256xi32>
    %17 = arith.addi %6, %16 : vector<4x256xi32>
    %18 = arith.select %15, %17, %6 : vector<4x256xi1>, vector<4x256xi32>
    %c0_i32_5 = arith.constant 0 : i32
    %19 = vector.broadcast %c0_i32_5 : i32 to vector<4x256xi32>
    %20 = arith.cmpi eq, %18, %19 : vector<4x256xi32>
    %cst = arith.constant 0.000000e+00 : f32
    %21 = vector.broadcast %cst : f32 to vector<4x256xf32>
    %22 = arith.select %20, %21, %1 : vector<4x256xi1>, vector<4x256xf32>
    %c15_i32 = arith.constant 15 : i32
    %23 = vector.broadcast %c15_i32 : i32 to vector<4x256xi32>
    %24 = arith.cmpi eq, %18, %23 : vector<4x256xi32>
    %cst_6 = arith.constant 0.000000e+00 : f32
    %25 = vector.broadcast %cst_6 : f32 to vector<4x256xf32>
    %26 = arith.select %24, %25, %1 : vector<4x256xi1>, vector<4x256xf32>
    %cst_7 = arith.constant 0.000000e+00 : f32
    %27 = vector.broadcast %cst_7 : f32 to vector<4x17xf32>
    %c0_8 = arith.constant 0 : index
    %c0_9 = arith.constant 0 : index
    %28 = vector.load %arg7[%c0_8, %c0_9] : memref<36x256xf32, #tpu.memory_space<vmem>>, vector<4x17xf32>
    tpu.vector_store %arg7[%c0_8, %c0_9], %27 {strides = array<i32>} : memref<36x256xf32, #tpu.memory_space<vmem>>, vector<4x17xf32>,
    %29 = vector.extract_strided_slice %26 {offsets = [0, 0], sizes = [4, 239], strides = [1, 1]} : vector<4x256xf32> to vector<4x239xf32>
    %c0_10 = arith.constant 0 : index
    %c17 = arith.constant 17 : index
    %30 = vector.load %arg7[%c0_10, %c17] : memref<36x256xf32, #tpu.memory_space<vmem>>, vector<4x239xf32>
    tpu.vector_store %arg7[%c0_10, %c17], %29 {strides = array<i32>} : memref<36x256xf32, #tpu.memory_space<vmem>>, vector<4x239xf32>,
    %cst_11 = arith.constant 0.000000e+00 : f32
    %31 = vector.broadcast %cst_11 : f32 to vector<4x16xf32>
    %c4 = arith.constant 4 : index
    %c0_12 = arith.constant 0 : index
    %32 = vector.load %arg7[%c4, %c0_12] : memref<36x256xf32, #tpu.memory_space<vmem>>, vector<4x16xf32>
    tpu.vector_store %arg7[%c4, %c0_12], %31 {strides = array<i32>} : memref<36x256xf32, #tpu.memory_space<vmem>>, vector<4x16xf32>,
    %33 = vector.extract_strided_slice %1 {offsets = [0, 0], sizes = [4, 240], strides = [1, 1]} : vector<4x256xf32> to vector<4x240xf32>
    %c4_13 = arith.constant 4 : index
    %c16 = arith.constant 16 : index
    %34 = vector.load %arg7[%c4_13, %c16] : memref<36x256xf32, #tpu.memory_space<vmem>>, vector<4x240xf32>
    tpu.vector_store %arg7[%c4_13, %c16], %33 {strides = array<i32>} : memref<36x256xf32, #tpu.memory_space<vmem>>, vector<4x240xf32>,
    %cst_14 = arith.constant 0.000000e+00 : f32
    %35 = vector.broadcast %cst_14 : f32 to vector<4x15xf32>
    %c8 = arith.constant 8 : index
    %c0_15 = arith.constant 0 : index
    %36 = vector.load %arg7[%c8, %c0_15] : memref<36x256xf32, #tpu.memory_space<vmem>>, vector<4x15xf32>
    tpu.vector_store %arg7[%c8, %c0_15], %35 {strides = array<i32>} : memref<36x256xf32, #tpu.memory_space<vmem>>, vector<4x15xf32>,
    %37 = vector.extract_strided_slice %22 {offsets = [0, 0], sizes = [4, 241], strides = [1, 1]} : vector<4x256xf32> to vector<4x241xf32>
    %c8_16 = arith.constant 8 : index
    %c15 = arith.constant 15 : index
    %38 = vector.load %arg7[%c8_16, %c15] : memref<36x256xf32, #tpu.memory_space<vmem>>, vector<4x241xf32>
    tpu.vector_store %arg7[%c8_16, %c15], %37 {strides = array<i32>} : memref<36x256xf32, #tpu.memory_space<vmem>>, vector<4x241xf32>,
    %cst_17 = arith.constant 0.000000e+00 : f32
    %39 = vector.broadcast %cst_17 : f32 to vector<4x1xf32>
    %c12 = arith.constant 12 : index
    %c0_18 = arith.constant 0 : index
    %40 = vector.load %arg7[%c12, %c0_18] : memref<36x256xf32, #tpu.memory_space<vmem>>, vector<4x1xf32>
    tpu.vector_store %arg7[%c12, %c0_18], %39 {strides = array<i32>} : memref<36x256xf32, #tpu.memory_space<vmem>>, vector<4x1xf32>,
    %41 = vector.extract_strided_slice %26 {offsets = [0, 0], sizes = [4, 255], strides = [1, 1]} : vector<4x256xf32> to vector<4x255xf32>
    %c12_19 = arith.constant 12 : index
    %c1 = arith.constant 1 : index
    %42 = vector.load %arg7[%c12_19, %c1] : memref<36x256xf32, #tpu.memory_space<vmem>>, vector<4x255xf32>
    tpu.vector_store %arg7[%c12_19, %c1], %41 {strides = array<i32>} : memref<36x256xf32, #tpu.memory_space<vmem>>, vector<4x255xf32>,
    %c16_20 = arith.constant 16 : index
    %c0_21 = arith.constant 0 : index
    %43 = vector.load %arg7[%c16_20, %c0_21] : memref<36x256xf32, #tpu.memory_space<vmem>>, vector<4x256xf32>
    tpu.vector_store %arg7[%c16_20, %c0_21], %1 {strides = array<i32>} : memref<36x256xf32, #tpu.memory_space<vmem>>, vector<4x256xf32>,
    %44 = vector.extract_strided_slice %22 {offsets = [0, 1], sizes = [4, 255], strides = [1, 1]} : vector<4x256xf32> to vector<4x255xf32>
    %c20 = arith.constant 20 : index
    %c0_22 = arith.constant 0 : index
    %45 = vector.load %arg7[%c20, %c0_22] : memref<36x256xf32, #tpu.memory_space<vmem>>, vector<4x255xf32>
    tpu.vector_store %arg7[%c20, %c0_22], %44 {strides = array<i32>} : memref<36x256xf32, #tpu.memory_space<vmem>>, vector<4x255xf32>,
    %cst_23 = arith.constant 0.000000e+00 : f32
    %46 = vector.broadcast %cst_23 : f32 to vector<4x1xf32>
    %c20_24 = arith.constant 20 : index
    %c255 = arith.constant 255 : index
    %47 = vector.load %arg7[%c20_24, %c255] : memref<36x256xf32, #tpu.memory_space<vmem>>, vector<4x1xf32>
    tpu.vector_store %arg7[%c20_24, %c255], %46 {strides = array<i32>} : memref<36x256xf32, #tpu.memory_space<vmem>>, vector<4x1xf32>,
    %48 = vector.extract_strided_slice %26 {offsets = [0, 15], sizes = [4, 241], strides = [1, 1]} : vector<4x256xf32> to vector<4x241xf32>
    %c24 = arith.constant 24 : index
    %c0_25 = arith.constant 0 : index
    %49 = vector.load %arg7[%c24, %c0_25] : memref<36x256xf32, #tpu.memory_space<vmem>>, vector<4x241xf32>
    tpu.vector_store %arg7[%c24, %c0_25], %48 {strides = array<i32>} : memref<36x256xf32, #tpu.memory_space<vmem>>, vector<4x241xf32>,
    %cst_26 = arith.constant 0.000000e+00 : f32
    %50 = vector.broadcast %cst_26 : f32 to vector<4x15xf32>
    %c24_27 = arith.constant 24 : index
    %c241 = arith.constant 241 : index
    %51 = vector.load %arg7[%c24_27, %c241] : memref<36x256xf32, #tpu.memory_space<vmem>>, vector<4x15xf32>
    tpu.vector_store %arg7[%c24_27, %c241], %50 {strides = array<i32>} : memref<36x256xf32, #tpu.memory_space<vmem>>, vector<4x15xf32>,
    %52 = vector.extract_strided_slice %1 {offsets = [0, 16], sizes = [4, 240], strides = [1, 1]} : vector<4x256xf32> to vector<4x240xf32>
    %c28 = arith.constant 28 : index
    %c0_28 = arith.constant 0 : index
    %53 = vector.load %arg7[%c28, %c0_28] : memref<36x256xf32, #tpu.memory_space<vmem>>, vector<4x240xf32>
    tpu.vector_store %arg7[%c28, %c0_28], %52 {strides = array<i32>} : memref<36x256xf32, #tpu.memory_space<vmem>>, vector<4x240xf32>,
    %cst_29 = arith.constant 0.000000e+00 : f32
    %54 = vector.broadcast %cst_29 : f32 to vector<4x16xf32>
    %c28_30 = arith.constant 28 : index
    %c240 = arith.constant 240 : index
    %55 = vector.load %arg7[%c28_30, %c240] : memref<36x256xf32, #tpu.memory_space<vmem>>, vector<4x16xf32>
    tpu.vector_store %arg7[%c28_30, %c240], %54 {strides = array<i32>} : memref<36x256xf32, #tpu.memory_space<vmem>>, vector<4x16xf32>,
    %56 = vector.extract_strided_slice %22 {offsets = [0, 17], sizes = [4, 239], strides = [1, 1]} : vector<4x256xf32> to vector<4x239xf32>
    %c32 = arith.constant 32 : index
    %c0_31 = arith.constant 0 : index
    %57 = vector.load %arg7[%c32, %c0_31] : memref<36x256xf32, #tpu.memory_space<vmem>>, vector<4x239xf32>
    tpu.vector_store %arg7[%c32, %c0_31], %56 {strides = array<i32>} : memref<36x256xf32, #tpu.memory_space<vmem>>, vector<4x239xf32>,
    %cst_32 = arith.constant 0.000000e+00 : f32
    %58 = vector.broadcast %cst_32 : f32 to vector<4x17xf32>
    %c32_33 = arith.constant 32 : index
    %c239 = arith.constant 239 : index
    %59 = vector.load %arg7[%c32_33, %c239] : memref<36x256xf32, #tpu.memory_space<vmem>>, vector<4x17xf32>
    tpu.vector_store %arg7[%c32_33, %c239], %58 {strides = array<i32>} : memref<36x256xf32, #tpu.memory_space<vmem>>, vector<4x17xf32>,
    %c0_34 = arith.constant 0 : index
    %c0_35 = arith.constant 0 : index
    %60 = vector.load %arg2[%c0_34, %c0_35] : memref<8x36xf32, #tpu.memory_space<vmem>>, vector<8x36xf32>
    %c0_36 = arith.constant 0 : index
    %c0_37 = arith.constant 0 : index
    %61 = vector.load %arg7[%c0_36, %c0_37] : memref<36x256xf32, #tpu.memory_space<vmem>>, vector<36x256xf32>
    %cst_38 = arith.constant dense<0.000000e+00> : vector<8x256xf32>
    %62 = tpu.matmul %60, %61, %cst_38 {dimension_numbers = #tpu.dot_dimension_numbers<[1], [0], [0], [1], [0, 0, 1, 1], [], []>} : vector<8x36xf32>, vector<36x256xf32>, vector<8x256xf32> -> vector<8x256xf32>
    %c0_39 = arith.constant 0 : index
    %c0_40 = arith.constant 0 : index
    %63 = vector.load %arg3[%c0_39, %c0_40] : memref<8x1xf32, #tpu.memory_space<vmem>>, vector<8x1xf32>
    %64 = vector.broadcast %63 : vector<8x1xf32> to vector<8x256xf32>
    %65 = arith.addf %62, %64 : vector<8x256xf32>
    %cst_41 = arith.constant 0.000000e+00 : f32
    %66 = vector.broadcast %cst_41 : f32 to vector<8x256xf32>
    %67 = arith.maximumf %65, %66 : vector<8x256xf32>
    %68 = tpu.iota {dimensions = array<i32: 1>} : vector<8x256xi32>
    %c16_i32_42 = arith.constant 16 : i32
    %c0_i32_43 = arith.constant 0 : i32
    %69 = arith.cmpi eq, %c16_i32_42, %c0_i32_43 : i32
    %c1_i32_44 = arith.constant 1 : i32
    %70 = arith.select %69, %c1_i32_44, %c16_i32_42 : i32
    %71 = vector.broadcast %70 : i32 to vector<8x256xi32>
    %72 = arith.remsi %68, %71 : vector<8x256xi32>
    %c0_i32_45 = arith.constant 0 : i32
    %73 = vector.broadcast %c0_i32_45 : i32 to vector<8x256xi32>
    %74 = arith.cmpi ne, %72, %73 : vector<8x256xi32>
    %c0_i32_46 = arith.constant 0 : i32
    %75 = vector.broadcast %c0_i32_46 : i32 to vector<8x256xi32>
    %76 = arith.cmpi slt, %72, %75 : vector<8x256xi32>
    %c0_i32_47 = arith.constant 0 : i32
    %77 = arith.cmpi slt, %70, %c0_i32_47 : i32
    %78 = vector.broadcast %77 : i1 to vector<8x256xi1>
    %79 = vector.broadcast %78 : vector<8x256xi1> to vector<8x256xi1>
    %80 = arith.xori %76, %79 : vector<8x256xi1>
    %81 = arith.andi %80, %74 : vector<8x256xi1>
    %82 = vector.broadcast %70 : i32 to vector<8x256xi32>
    %83 = arith.addi %72, %82 : vector<8x256xi32>
    %84 = arith.select %81, %83, %72 : vector<8x256xi1>, vector<8x256xi32>
    %c0_i32_48 = arith.constant 0 : i32
    %85 = vector.broadcast %c0_i32_48 : i32 to vector<8x256xi32>
    %86 = arith.cmpi eq, %84, %85 : vector<8x256xi32>
    %cst_49 = arith.constant 0.000000e+00 : f32
    %87 = vector.broadcast %cst_49 : f32 to vector<8x256xf32>
    %88 = arith.select %86, %87, %67 : vector<8x256xi1>, vector<8x256xf32>
    %c15_i32_50 = arith.constant 15 : i32
    %89 = vector.broadcast %c15_i32_50 : i32 to vector<8x256xi32>
    %90 = arith.cmpi eq, %84, %89 : vector<8x256xi32>
    %cst_51 = arith.constant 0.000000e+00 : f32
    %91 = vector.broadcast %cst_51 : f32 to vector<8x256xf32>
    %92 = arith.select %90, %91, %67 : vector<8x256xi1>, vector<8x256xf32>
    %cst_52 = arith.constant 0.000000e+00 : f32
    %93 = vector.broadcast %cst_52 : f32 to vector<8x17xf32>
    %c0_53 = arith.constant 0 : index
    %c0_54 = arith.constant 0 : index
    %94 = vector.load %arg8[%c0_53, %c0_54] : memref<72x256xf32, #tpu.memory_space<vmem>>, vector<8x17xf32>
    tpu.vector_store %arg8[%c0_53, %c0_54], %93 {strides = array<i32>} : memref<72x256xf32, #tpu.memory_space<vmem>>, vector<8x17xf32>,
    %95 = vector.extract_strided_slice %92 {offsets = [0, 0], sizes = [8, 239], strides = [1, 1]} : vector<8x256xf32> to vector<8x239xf32>
    %c0_55 = arith.constant 0 : index
    %c17_56 = arith.constant 17 : index
    %96 = vector.load %arg8[%c0_55, %c17_56] : memref<72x256xf32, #tpu.memory_space<vmem>>, vector<8x239xf32>
    tpu.vector_store %arg8[%c0_55, %c17_56], %95 {strides = array<i32>} : memref<72x256xf32, #tpu.memory_space<vmem>>, vector<8x239xf32>,
    %cst_57 = arith.constant 0.000000e+00 : f32
    %97 = vector.broadcast %cst_57 : f32 to vector<8x16xf32>
    %c8_58 = arith.constant 8 : index
    %c0_59 = arith.constant 0 : index
    %98 = vector.load %arg8[%c8_58, %c0_59] : memref<72x256xf32, #tpu.memory_space<vmem>>, vector<8x16xf32>
    tpu.vector_store %arg8[%c8_58, %c0_59], %97 {strides = array<i32>} : memref<72x256xf32, #tpu.memory_space<vmem>>, vector<8x16xf32>,
    %99 = vector.extract_strided_slice %67 {offsets = [0, 0], sizes = [8, 240], strides = [1, 1]} : vector<8x256xf32> to vector<8x240xf32>
    %c8_60 = arith.constant 8 : index
    %c16_61 = arith.constant 16 : index
    %100 = vector.load %arg8[%c8_60, %c16_61] : memref<72x256xf32, #tpu.memory_space<vmem>>, vector<8x240xf32>
    tpu.vector_store %arg8[%c8_60, %c16_61], %99 {strides = array<i32>} : memref<72x256xf32, #tpu.memory_space<vmem>>, vector<8x240xf32>,
    %cst_62 = arith.constant 0.000000e+00 : f32
    %101 = vector.broadcast %cst_62 : f32 to vector<8x15xf32>
    %c16_63 = arith.constant 16 : index
    %c0_64 = arith.constant 0 : index
    %102 = vector.load %arg8[%c16_63, %c0_64] : memref<72x256xf32, #tpu.memory_space<vmem>>, vector<8x15xf32>
    tpu.vector_store %arg8[%c16_63, %c0_64], %101 {strides = array<i32>} : memref<72x256xf32, #tpu.memory_space<vmem>>, vector<8x15xf32>,
    %103 = vector.extract_strided_slice %88 {offsets = [0, 0], sizes = [8, 241], strides = [1, 1]} : vector<8x256xf32> to vector<8x241xf32>
    %c16_65 = arith.constant 16 : index
    %c15_66 = arith.constant 15 : index
    %104 = vector.load %arg8[%c16_65, %c15_66] : memref<72x256xf32, #tpu.memory_space<vmem>>, vector<8x241xf32>
    tpu.vector_store %arg8[%c16_65, %c15_66], %103 {strides = array<i32>} : memref<72x256xf32, #tpu.memory_space<vmem>>, vector<8x241xf32>,
    %cst_67 = arith.constant 0.000000e+00 : f32
    %105 = vector.broadcast %cst_67 : f32 to vector<8x1xf32>
    %c24_68 = arith.constant 24 : index
    %c0_69 = arith.constant 0 : index
    %106 = vector.load %arg8[%c24_68, %c0_69] : memref<72x256xf32, #tpu.memory_space<vmem>>, vector<8x1xf32>
    tpu.vector_store %arg8[%c24_68, %c0_69], %105 {strides = array<i32>} : memref<72x256xf32, #tpu.memory_space<vmem>>, vector<8x1xf32>,
    %107 = vector.extract_strided_slice %92 {offsets = [0, 0], sizes = [8, 255], strides = [1, 1]} : vector<8x256xf32> to vector<8x255xf32>
    %c24_70 = arith.constant 24 : index
    %c1_71 = arith.constant 1 : index
    %108 = vector.load %arg8[%c24_70, %c1_71] : memref<72x256xf32, #tpu.memory_space<vmem>>, vector<8x255xf32>
    tpu.vector_store %arg8[%c24_70, %c1_71], %107 {strides = array<i32>} : memref<72x256xf32, #tpu.memory_space<vmem>>, vector<8x255xf32>,
    %c32_72 = arith.constant 32 : index
    %c0_73 = arith.constant 0 : index
    %109 = vector.load %arg8[%c32_72, %c0_73] : memref<72x256xf32, #tpu.memory_space<vmem>>, vector<8x256xf32>
    tpu.vector_store %arg8[%c32_72, %c0_73], %67 {strides = array<i32>} : memref<72x256xf32, #tpu.memory_space<vmem>>, vector<8x256xf32>,
    %110 = vector.extract_strided_slice %88 {offsets = [0, 1], sizes = [8, 255], strides = [1, 1]} : vector<8x256xf32> to vector<8x255xf32>
    %c40 = arith.constant 40 : index
    %c0_74 = arith.constant 0 : index
    %111 = vector.load %arg8[%c40, %c0_74] : memref<72x256xf32, #tpu.memory_space<vmem>>, vector<8x255xf32>
    tpu.vector_store %arg8[%c40, %c0_74], %110 {strides = array<i32>} : memref<72x256xf32, #tpu.memory_space<vmem>>, vector<8x255xf32>,
    %cst_75 = arith.constant 0.000000e+00 : f32
    %112 = vector.broadcast %cst_75 : f32 to vector<8x1xf32>
    %c40_76 = arith.constant 40 : index
    %c255_77 = arith.constant 255 : index
    %113 = vector.load %arg8[%c40_76, %c255_77] : memref<72x256xf32, #tpu.memory_space<vmem>>, vector<8x1xf32>
    tpu.vector_store %arg8[%c40_76, %c255_77], %112 {strides = array<i32>} : memref<72x256xf32, #tpu.memory_space<vmem>>, vector<8x1xf32>,
    %114 = vector.extract_strided_slice %92 {offsets = [0, 15], sizes = [8, 241], strides = [1, 1]} : vector<8x256xf32> to vector<8x241xf32>
    %c48 = arith.constant 48 : index
    %c0_78 = arith.constant 0 : index
    %115 = vector.load %arg8[%c48, %c0_78] : memref<72x256xf32, #tpu.memory_space<vmem>>, vector<8x241xf32>
    tpu.vector_store %arg8[%c48, %c0_78], %114 {strides = array<i32>} : memref<72x256xf32, #tpu.memory_space<vmem>>, vector<8x241xf32>,
    %cst_79 = arith.constant 0.000000e+00 : f32
    %116 = vector.broadcast %cst_79 : f32 to vector<8x15xf32>
    %c48_80 = arith.constant 48 : index
    %c241_81 = arith.constant 241 : index
    %117 = vector.load %arg8[%c48_80, %c241_81] : memref<72x256xf32, #tpu.memory_space<vmem>>, vector<8x15xf32>
    tpu.vector_store %arg8[%c48_80, %c241_81], %116 {strides = array<i32>} : memref<72x256xf32, #tpu.memory_space<vmem>>, vector<8x15xf32>,
    %118 = vector.extract_strided_slice %67 {offsets = [0, 16], sizes = [8, 240], strides = [1, 1]} : vector<8x256xf32> to vector<8x240xf32>
    %c56 = arith.constant 56 : index
    %c0_82 = arith.constant 0 : index
    %119 = vector.load %arg8[%c56, %c0_82] : memref<72x256xf32, #tpu.memory_space<vmem>>, vector<8x240xf32>
    tpu.vector_store %arg8[%c56, %c0_82], %118 {strides = array<i32>} : memref<72x256xf32, #tpu.memory_space<vmem>>, vector<8x240xf32>,
    %cst_83 = arith.constant 0.000000e+00 : f32
    %120 = vector.broadcast %cst_83 : f32 to vector<8x16xf32>
    %c56_84 = arith.constant 56 : index
    %c240_85 = arith.constant 240 : index
    %121 = vector.load %arg8[%c56_84, %c240_85] : memref<72x256xf32, #tpu.memory_space<vmem>>, vector<8x16xf32>
    tpu.vector_store %arg8[%c56_84, %c240_85], %120 {strides = array<i32>} : memref<72x256xf32, #tpu.memory_space<vmem>>, vector<8x16xf32>,
    %122 = vector.extract_strided_slice %88 {offsets = [0, 17], sizes = [8, 239], strides = [1, 1]} : vector<8x256xf32> to vector<8x239xf32>
    %c64 = arith.constant 64 : index
    %c0_86 = arith.constant 0 : index
    %123 = vector.load %arg8[%c64, %c0_86] : memref<72x256xf32, #tpu.memory_space<vmem>>, vector<8x239xf32>
    tpu.vector_store %arg8[%c64, %c0_86], %122 {strides = array<i32>} : memref<72x256xf32, #tpu.memory_space<vmem>>, vector<8x239xf32>,
    %cst_87 = arith.constant 0.000000e+00 : f32
    %124 = vector.broadcast %cst_87 : f32 to vector<8x17xf32>
    %c64_88 = arith.constant 64 : index
    %c239_89 = arith.constant 239 : index
    %125 = vector.load %arg8[%c64_88, %c239_89] : memref<72x256xf32, #tpu.memory_space<vmem>>, vector<8x17xf32>
    tpu.vector_store %arg8[%c64_88, %c239_89], %124 {strides = array<i32>} : memref<72x256xf32, #tpu.memory_space<vmem>>, vector<8x17xf32>,
    %c0_90 = arith.constant 0 : index
    %c0_91 = arith.constant 0 : index
    %126 = vector.load %arg4[%c0_90, %c0_91] : memref<4x72xf32, #tpu.memory_space<vmem>>, vector<4x72xf32>
    %c0_92 = arith.constant 0 : index
    %c0_93 = arith.constant 0 : index
    %127 = vector.load %arg8[%c0_92, %c0_93] : memref<72x256xf32, #tpu.memory_space<vmem>>, vector<72x256xf32>
    %cst_94 = arith.constant dense<0.000000e+00> : vector<4x256xf32>
    %128 = tpu.matmul %126, %127, %cst_94 {dimension_numbers = #tpu.dot_dimension_numbers<[1], [0], [0], [1], [0, 0, 1, 1], [], []>} : vector<4x72xf32>, vector<72x256xf32>, vector<4x256xf32> -> vector<4x256xf32>
    %c0_95 = arith.constant 0 : index
    %c0_96 = arith.constant 0 : index
    %129 = vector.load %arg5[%c0_95, %c0_96] : memref<4x1xf32, #tpu.memory_space<vmem>>, vector<4x1xf32>
    %130 = vector.broadcast %129 : vector<4x1xf32> to vector<4x256xf32>
    %131 = arith.addf %128, %130 : vector<4x256xf32>
    %132 = arith.addf %131, %1 : vector<4x256xf32>
    %c0_97 = arith.constant 0 : index
    %c0_98 = arith.constant 0 : index
    %c0_99 = arith.constant 0 : index
    %133 = vector.load %arg6[%c0_97, %c0_98, %c0_99] : memref<1x4x256xf32, #tpu.memory_space<vmem>>, vector<1x4x256xf32>
    %134 = vector.shape_cast %133 : vector<1x4x256xf32> to vector<4x256xf32>
    %135 = vector.shape_cast %132 : vector<4x256xf32> to vector<1x4x256xf32>
    tpu.vector_store %arg6[%c0_97, %c0_98, %c0_99], %135 {strides = array<i32>} : memref<1x4x256xf32, #tpu.memory_space<vmem>>, vector<1x4x256xf32>,
    return
  }
  func.func @transform_0(%arg0: i32) -> (i32, i32, i32) {
    %c0_i32 = arith.constant 0 : i32
    %c0_i32_0 = arith.constant 0 : i32
    %c0_i32_1 = arith.constant 0 : i32
    return %arg0, %c0_i32, %c0_i32_0 : i32, i32, i32
  }
  func.func @transform_1(%arg0: i32) -> (i32, i32) {
    %c0_i32 = arith.constant 0 : i32
    %c0_i32_0 = arith.constant 0 : i32
    %c0_i32_1 = arith.constant 0 : i32
    return %c0_i32, %c0_i32_0 : i32, i32
  }
  func.func @transform_2(%arg0: i32) -> (i32, i32) {
    %c0_i32 = arith.constant 0 : i32
    %c0_i32_0 = arith.constant 0 : i32
    %c0_i32_1 = arith.constant 0 : i32
    return %c0_i32, %c0_i32_0 : i32, i32
  }
  func.func @transform_3(%arg0: i32) -> (i32, i32) {
    %c0_i32 = arith.constant 0 : i32
    %c0_i32_0 = arith.constant 0 : i32
    %c0_i32_1 = arith.constant 0 : i32
    return %c0_i32, %c0_i32_0 : i32, i32
  }
  func.func @transform_4(%arg0: i32) -> (i32, i32) {
    %c0_i32 = arith.constant 0 : i32
    %c0_i32_0 = arith.constant 0 : i32
    %c0_i32_1 = arith.constant 0 : i32
    return %c0_i32, %c0_i32_0 : i32, i32
  }
  func.func @transform_5(%arg0: i32) -> (i32, i32, i32) {
    %c0_i32 = arith.constant 0 : i32
    %c0_i32_0 = arith.constant 0 : i32
    %c0_i32_1 = arith.constant 0 : i32
    return %arg0, %c0_i32, %c0_i32_0 : i32, i32, i32
  }
}

</mosaic_0001>

<bundles_post_ra>
// kernel: rb_forward.1
= control target key start
LH: loop header
LB: loop body
LE: loop exit
PB: predicated region body
PF: predicated region fallthrough
CT: control target
= control target key end

     0   :  { %10 = vsyncpa [#allocation5], 0  ;;  %s1717_s0 = inlined_call_operand.hbm [shape: f32[2,4,256], index: 0, kind: input, shape index: {}]   ;;  %s1718_s1 = inlined_call_operand.hbm [shape: f32[8,36], index: 1, kind: input, shape index: {}]   ;;  %s1719_s2 = inlined_call_operand.hbm [shape: f32[8,1], index: 2, kind: input, shape index: {}]   ;;  %s1720_s3 = inlined_call_operand.hbm [shape: f32[4,72], index: 3, kind: input, shape index: {}]   ;;  %s1721_s4 = inlined_call_operand.hbm [shape: f32[4,1], index: 4, kind: input, shape index: {}]   ;;  %s1722_s5 = inlined_call_operand.hbm [shape: f32[2,4,256], index: 5, kind: output, shape index: {}]  }
   0x1   :  { %12 = vsyncpa [#allocation5 + $0x1], 0 }
   0x2   :  { %13 = vsyncpa [#allocation8], 0 }
   0x3   :  { %14 = vsyncpa [#allocation11], 0 }
   0x4   :  { %15 = vsyncpa [#allocation6], 0 }
   0x5   :  { %17 = vsyncpa [#allocation6 + $0x1], 0  ;;  %s1292_s18 = smov 0   ;;  %s1294_s19 = smov 0  }
   0x6   :  { %s1296_s20 = smov 0   ;;  %s1298_s21 = smov 0  }
   0x7 LB: > { %s1246_s22 = smov [#allocation7]   ;;  %s1313_s24 = sadd.s32 4294967295, %s1244_s21   ;;  %s1244_s21 = sphi %s1298_s21, %s1754_s21   ;;  %s1240_s20 = sphi %s1296_s20, %s1753_s20   ;;  %s1236_s19 = sphi %s1294_s19, %s1752_s19   ;;  %s1232_s18 = sphi %s1292_s18, %s1751_s18  }
   0x8   : > { %s177_s23 = sshll.u32 %s1246_s22, 4  ;;  %p877_p0 = scmp.ge.s32.totalorder %s1244_s21, 1  ;;  %s1318_s23 = int_to_ptr.vmem [resolvable:$true] %s177_s23 }
   0x9   : > { %p1723_p1 = scmp.eq.s32.totalorder %s1313_s24, 0  ;;  %p164_p2 = scmp.lt.s32.totalorder %s1244_s21, 3 }
   0xa   : > { %s1247_s26 = smov [#allocation10]   ;;  %s1248_s28 = smov [#allocation9]  }
   0xb   : > { %p1320_p3 = pnand %p877_p0, %p164_p2  ;;  %s199_s27 = sshll.u32 %s1247_s26, 4  ;;  %s1327_s27 = int_to_ptr.vmem [resolvable:$true] %s199_s27 }
   0xc   : > { %s188_s29 = sshll.u32 %s1248_s28, 4  ;;  %s1249_s6 = smov [#allocation12]   ;;  %s1335_s29 = int_to_ptr.vmem [resolvable:$true] %s188_s29 }
   0xd   : > { %s1726_s25 = scalar_select %p1320_p3, 1, 0 }
   0xe   : > { %p948_p5 = pneg %p1320_p3  ;;  %s1337_s7 = sshll.u32 %s1249_s6, 4  ;;  %s211_s7 = int_to_ptr.vmem [resolvable:$true] %s1337_s7 }
   0xf   : > { %s1028_s10 = scalar_lea.hbm %s1718_s1, 128 }
  0x10   : > { %p1331_p6 = pnand %p948_p5, %p1723_p1  ;;  %p1029_p7 = scmp.ne.s32.totalorder %s1718_s1, %s1028_s10 }
  0x11   : > { %p1035_p11 = scmp.lt.u32.totalorder %s1028_s10, %s1718_s1 }
  0x12   : > { %p1347_p8 = pneg %p1331_p6 }
  0x14   : > { %p1031_p9 = pnand %p1347_p8, %p1029_p7 }
  0x16   : > { %p1032_p10 = pneg %p1031_p9 }
  0x18   : > { %p1037_p12 = pnand %p1035_p11, %p1032_p10 }
  0x1a   : > { %1040 = shalt.err (!%p1037_p12)
}
  0x1b   : > { %s1041_s16 = scalar_lea.vmem %s1318_s23, 128  ;;  %p1049_p5 = scmp.lt.s32.totalorder %s1318_s23, %s1318_s23 }
  0x1c   : > { %p1042_p13 = scmp.ne.s32.totalorder %s1318_s23, %s1041_s16  ;;  %p1050_p4 = scmp.lt.s32.totalorder %s1041_s16, %s1041_s16 }
  0x1e   : > { %p1044_p0 = pnand %p1042_p13, %p1347_p8  ;;  %p1051_p7 = por %p1050_p4, %p1049_p5 }
  0x20   : > { %p1045_p2 = pneg %p1044_p0 }
  0x22   : > { %p1052_p9 = pnand %p1051_p7, %p1045_p2 }
  0x24   : > { %1055 = shalt.err (!%p1052_p9)
}
  0x25   : > { %951 = dma.hbm_to_vmem [thread:$0]  (!%p1331_p6), %s1718_s1, 128, %s1318_s23, [#allocation8]  }
  0x26   : > { %s1056_s6 = scalar_lea.hbm %s1720_s3, 64 }
  0x27   : > { %p1057_p10 = scmp.ne.s32.totalorder %s1720_s3, %s1056_s6  ;;  %p1063_p12 = scmp.lt.u32.totalorder %s1056_s6, %s1720_s3 }
  0x29   : > { %p1059_p4 = pnand %p1057_p10, %p1347_p8 }
  0x2b   : > { %p1060_p11 = pneg %p1059_p4 }
  0x2d   : > { %p1065_p13 = pnand %p1063_p12, %p1060_p11 }
  0x2f   : > { %1068 = shalt.err (!%p1065_p13)
}
  0x30   : > { %s1069_s23 = scalar_lea.vmem %s1327_s27, 64  ;;  %p1077_p7 = scmp.lt.s32.totalorder %s1327_s27, %s1327_s27 }
  0x31   : > { %p1070_p0 = scmp.ne.s32.totalorder %s1327_s27, %s1069_s23  ;;  %p1078_p9 = scmp.lt.s32.totalorder %s1069_s23, %s1069_s23 }
  0x33   : > { %p1072_p2 = pnand %p1070_p0, %p1347_p8  ;;  %p1079_p10 = por %p1078_p9, %p1077_p7 }
  0x35   : > { %p1073_p5 = pneg %p1072_p2 }
  0x37   : > { %p1080_p4 = pnand %p1079_p10, %p1073_p5 }
  0x39   : > { %1083 = shalt.err (!%p1080_p4)
}
  0x3a   : > { %957 = dma.hbm_to_vmem [thread:$0]  (!%p1331_p6), %s1720_s3, 64, %s1327_s27, [#allocation11]  }
  0x3b   : > { %s1084_s17 = scalar_lea.hbm %s1719_s2, 128 }
  0x3c   : > { %p1085_p11 = scmp.ne.s32.totalorder %s1719_s2, %s1084_s17  ;;  %p1091_p0 = scmp.lt.u32.totalorder %s1084_s17, %s1719_s2 }
  0x3e   : > { %p1087_p12 = pnand %p1085_p11, %p1347_p8 }
  0x40   : > { %p1088_p13 = pneg %p1087_p12 }
  0x42   : > { %p1093_p2 = pnand %p1091_p0, %p1088_p13 }
  0x44   : > { %1096 = shalt.err (!%p1093_p2)
}
  0x45   : > { %s1097_s27 = scalar_lea.vmem %s1335_s29, 128  ;;  %p1105_p10 = scmp.lt.s32.totalorder %s1335_s29, %s1335_s29 }
  0x46   : > { %p1098_p5 = scmp.ne.s32.totalorder %s1335_s29, %s1097_s27  ;;  %p1106_p4 = scmp.lt.s32.totalorder %s1097_s27, %s1097_s27 }
  0x48   : > { %p1100_p7 = pnand %p1098_p5, %p1347_p8  ;;  %p1107_p11 = por %p1106_p4, %p1105_p10 }
  0x4a   : > { %p1101_p9 = pneg %p1100_p7 }
  0x4c   : > { %p1108_p12 = pnand %p1107_p11, %p1101_p9 }
  0x4e   : > { %1111 = shalt.err (!%p1108_p12)
}
  0x4f   : > { %954 = dma.hbm_to_vmem [thread:$0]  (!%p1331_p6), %s1719_s2, 128, %s1335_s29, [#allocation8]  }
  0x50   : > { %s1112_s23 = scalar_lea.hbm %s1721_s4, 64 }
  0x51   : > { %p1113_p13 = scmp.ne.s32.totalorder %s1721_s4, %s1112_s23  ;;  %p1119_p5 = scmp.lt.u32.totalorder %s1112_s23, %s1721_s4 }
  0x53   : > { %p1115_p0 = pnand %p1113_p13, %p1347_p8 }
  0x55   : > { %p1116_p2 = pneg %p1115_p0 }
  0x57   : > { %p1121_p7 = pnand %p1119_p5, %p1116_p2 }
  0x59   : > { %1124 = shalt.err (!%p1121_p7)
}
  0x5a   : > { %s1125_s17 = scalar_lea.vmem %s211_s7, 64  ;;  %p1133_p11 = scmp.lt.s32.totalorder %s211_s7, %s211_s7 }
  0x5b   : > { %p1126_p9 = scmp.ne.s32.totalorder %s211_s7, %s1125_s17  ;;  %p1134_p12 = scmp.lt.s32.totalorder %s1125_s17, %s1125_s17 }
  0x5d   : > { %p1128_p10 = pnand %p1126_p9, %p1347_p8  ;;  %p1135_p1 = por %p1134_p12, %p1133_p11 }
  0x5f   : > { %p1129_p4 = pneg %p1128_p10 }
  0x61   : > { %p1136_p3 = pnand %p1135_p1, %p1129_p4 }
  0x63   : > { %1139 = shalt.err (!%p1136_p3)
}
  0x64   : > { %960 = dma.hbm_to_vmem [thread:$0]  (!%p1331_p6), %s1721_s4, 64, %s211_s7, [#allocation11]  }
  0x65   : > { %s876_s13 = sadd.s32 4294967294, %s1244_s21   ;;  %s1435_s30 = sadd.s32 1, %s1244_s21  }
  0x66   : > { %s27_s26 = ssub.s32 %s1244_s21, %s1435_s30  ;;  %s30_s28 = sadd.s32 1, %s1240_s20 }
  0x67   : > { %p28_p1 = scmp.eq.s32.totalorder %s27_s26, 0  ;;  %p37_p3 = scmp.ne.s32.totalorder %s1240_s20, %s1236_s19 }
  0x68   : > { %p38_p8 = scmp.eq.s32.totalorder %s1244_s21, 0  ;;  %p43_p13 = scmp.ne.s32.totalorder %s1236_s19, %s1232_s18 }
  0x69   : > { %s1446_s6 = scalar_select %p28_p1, %s1240_s20, %s30_s28  }
  0x6a   : > { %p1448_p0 = por %p38_p8, %p37_p3  ;;  %p1730_p2 = scmp.eq.s32.totalorder %s1313_s24, 0 }
  0x6b   : > { %p151_p5 = scmp.eq.s32.totalorder %s1313_s24, 1  ;;  %p157_p7 = scmp.eq.s32.totalorder %s876_s13, 1 }
  0x6c   : > { %p1454_p6 = por %p1730_p2, %p43_p13  ;;  %p973_p9 = scmp.lt.s32.totalorder %s1244_s21, 2 }
  0x6d   : > { %s221_s8 = sand.u32 1, %s1240_s20   ;;  %p1461_p10 = por %p151_p5, %p37_p3 }
  0x6e   : > { %p1465_p4 = por %p157_p7, %p43_p13  ;;  %s883_s11 = sshll.u32 %s221_s8, 3 }
  0x6f   : > { %s1732_s9 = scalar_select %p1461_p10, 1, 0 }
  0x70   : > { %s1733_s10 = scalar_select %p1465_p4, 1, 0 }
  0x71   : > { %s902_s23 = sshll.u32 %s1244_s21, 7  ;;  %s225_s16 = scalar_lea.vmem [#allocation4], %s883_s11 }
  0x72   : > { %s1473_s15 = scalar_lea.hbm %s1717_s0, %s902_s23  ;;  %s233_s17 = sshll.u32 %s225_s16, 4  ;;  %s1475_s17 = int_to_ptr.vmem [resolvable:$true] %s233_s17 }
  0x73   : > { %p1479_p11 = pnand %p973_p9, %p1448_p0  ;;  %s222_s22 = scalar_lea.sflag [#allocation5], %s221_s8 }
  0x74   : > { %s1140_s13 = scalar_lea.hbm %s1473_s15, 128  ;;  %s1145_s11 = scalar_lea.hbm %s1717_s0, 256 }
  0x75   : > { %p1141_p12 = scmp.ne.s32.totalorder %s1473_s15, %s1140_s13  ;;  %p1142_p1 = pneg %p1479_p11 }
  0x76   : > { %p1146_p13 = scmp.lt.u32.totalorder %s1473_s15, %s1717_s0  ;;  %p1147_p0 = scmp.lt.u32.totalorder %s1145_s11, %s1140_s13 }
  0x77   : > { %p1143_p3 = pnand %p1142_p1, %p1141_p12  ;;  %p1149_p5 = scmp.lt.u32.totalorder %s1140_s13, %s1473_s15 }
  0x78   : > { %p1148_p2 = por %p1147_p0, %p1146_p13 }
  0x79   : > { %p1144_p8 = pneg %p1143_p3 }
  0x7a   : > { %p1150_p7 = por %p1149_p5, %p1148_p2 }
  0x7c   : > { %p1151_p9 = pnand %p1150_p7, %p1144_p8 }
  0x7e   : > { %1154 = shalt.err (!%p1151_p9)
}
  0x7f   : > { %s1155_s8 = scalar_lea.vmem %s1475_s17, 128  ;;  %s1250_s12 = smov [#allocation4]  }
  0x80   : > { %p1156_p12 = scmp.ne.s32.totalorder %s1475_s17, %s1155_s8  ;;  %s1160_s14 = sshll.u32 %s1250_s12, 4  ;;  %s1161_s14 = int_to_ptr.vmem [resolvable:$false] %s1160_s14 }
  0x81   : > { %s1162_s16 = scalar_lea.vmem %s1161_s14, 256  ;;  %p1163_p10 = scmp.lt.s32.totalorder %s1475_s17, %s1161_s14 }
  0x82   : > { %p1158_p3 = pnand %p1156_p12, %p1142_p1  ;;  %p1164_p13 = scmp.lt.s32.totalorder %s1162_s16, %s1155_s8 }
  0x84   : > { %p1159_p4 = pneg %p1158_p3  ;;  %p1165_p0 = por %p1164_p13, %p1163_p10 }
  0x86   : > { %p1166_p2 = pnand %p1165_p0, %p1159_p4 }
  0x88   : > { %1169 = shalt.err (!%p1166_p2)
}
  0x89   : > { %964 = dma.hbm_to_vmem [thread:$0]  (!%p1479_p11), %s1473_s15, 128, %s1475_s17, %s222_s22  }
  0x8a   : > { %p1735_p8 = scmp.ne.s32.totalorder %s1726_s25, 0 }
  0x8b   : > { %s1511_s13 = sand.u32 (!%p1735_p8), 1, %s1236_s19  }
  0x8c   : > { %242 = sbr.rel (%p1735_p8) target bundleno = 925 (0x39d), region = 40  ;;  %s887_s26 = sshll.u32 (!%p1735_p8), %s1511_s13, 3 }
  0x8d   : > { %s245_s28 = scalar_lea.sflag (!%p1735_p8), [#allocation5], %s1511_s13  ;;  %s248_s11 = scalar_lea.vmem (!%p1735_p8), [#allocation4], %s887_s26 }
  0x93   : > { %1215 = dma.done.wait (%p1454_p6), %s245_s28, 128  }
  0x94   : > { %1217 = vsyncadd (%p1454_p6), %s245_s28, 4294967168  ;;  %p1736_p10 = scmp.eq.s32.totalorder %s1313_s24, 0 }
  0x96   : > { %1219 = dma.done.wait (%p1736_p10), [#allocation8], 256   ;;  %p1737_p4 = pmov %p1736_p10 }
  0x98   : > { %1221 = vsyncadd (%p1737_p4), [#allocation8], 4294967040  ;;  %p1738_p11 = pmov %p1737_p4 }
  0x99   : > { %p1739_p1 = pmov %p1737_p4 }
  0x9a   : > { %1223 = dma.done.wait (%p1738_p11), [#allocation11], 128  }
  0x9b   : > { %1225 = vsyncadd (%p1739_p1), [#allocation11], 4294967168  ;;  %v292_v0 = vlaneseq  ;;  %vm330_vm0 = vcmask 134144   ;;  %v1251_v1 = vmov 0.0   ;;  %vm345_vm1 = vcmask 130052   ;;  %v1544_v7 = vld [vmem:[%s248_s11] sm:$0xff] }
  0x9c   : > { %331 = vst.msk [vmem:[#allocation2] sm:$0xf] %vm330_vm0, %v1251_v1  ;;  %vm352_vm2 = vcmask 130048   ;;  %537 = vmatprep.mubr.f32.mxu0 %v1251_v1  ;;  %739 = vmatprep.mubr.f32.mxu1 %v1251_v1  ;;  %vm359_vm3 = vcmask 117760   ;;  %vm367_vm4 = vcmask 121856   ;;  %vm338_vm5 = vcmask 138240  }
  0x9d   : > { %v293_v2 = vand.u32 127, %v292_v0  ;;  %346 = vst.msk [vmem:[#allocation2] sm:$0xf0] %vm345_vm1, %v1251_v1  ;;  %vm374_vm7 = vcmask 7172   ;;  %vm382_vm9 = vcmask 7168   ;;  %s1252_s25 = smov 16   ;;  %v347_v10 = vcombine.low %v1544_v7, %v1544_v7 }
  0x9e   : > { %563 = vst.msk [vmem:[#allocation3 + $0x10] sm:$0xff] %vm352_vm2, %v1251_v1  ;;  %350 = vrot.lane.b32.xlu1 %v1544_v7, %s1252_s25  ;;  %389 = vst [vmem:[#allocation2 + $0x20] sm:$0xf] %v1544_v7  ;;  %s1253_s7 = smov 17   ;;  %v1564_v11 = vcombine.high %v1544_v7, %v1544_v7  ;;  %s1254_s15 = smov 15   ;;  %v1260_v21 = vmov 0  }
  0x9f   : > { %360 = vst.msk [vmem:[#allocation2 + $0x10] sm:$0xf] %vm359_vm3, %v1251_v1  ;;  %v299_v3 = vand.u32 15, %v293_v2  ;;  %v294_v4 = vadd.s32 128, %v293_v2  ;;  %s1255_s17 = smov 1   ;;  %s1256_s29 = smov 113   ;;  %1025 = vset.pattern.permute.xlu0 %v1260_v21 }
  0xa0   : > { %576 = vst.msk [vmem:[#allocation3 + $0x20] sm:$0xff] %vm367_vm4, %v1251_v1  ;;  %390 = vst [vmem:[#allocation2 + $0x28] sm:$0xf] %v1564_v11  ;;  %s1257_s22 = smov 127   ;;  %s1258_s27 = smov 112   ;;  %v456_v22 = vld [vmem:[#allocation9] sm:$0xff] }
  0xa1   : > { %550 = vst.msk [vmem:[#allocation3] sm:$0xff] %vm338_vm5, %v1251_v1  ;;  %vm1540_vm6 = vcmp.eq.s32.totalorder %v299_v3, 15  ;;  %v306_v6 = vand.u32 15, %v294_v4  ;;  %vm1546_vm8 = vcmp.eq.s32.totalorder %v299_v3, 0  ;;  %s1259_s23 = smov 111   ;;  %vm342_vm12 = vcmask 1043592  }
  0xa2   : > { %375 = vst.msk [vmem:[#allocation2 + $0x10] sm:$0xf0] %vm374_vm7, %v1251_v1  ;;  %v328_v9 = vsel %vm1540_vm6, 0.0, %v1544_v7  ;;  %v324_v12 = vsel %vm1546_vm8, 0.0, %v1544_v7  ;;  %348 = vrot.lane.b32.xlu1 %v347_v10, %s1252_s25  ;;  %vm356_vm13 = vcmask 1047684   ;;  %vm371_vm14 = vcmask 1043576  }
  0xa3   : > { %589 = vst.msk [vmem:[#allocation3 + $0x30] sm:$0xff] %vm382_vm9, %v1251_v1  ;;  %334 = vrot.lane.b32.xlu0 %v328_v9, %s1253_s7  ;;  %vm1569_vm10 = vcmp.eq.s32.totalorder %v306_v6, 0  ;;  %vm1573_vm11 = vcmp.eq.s32.totalorder %v306_v6, 15  ;;  %v376_v18 = vrot.slane %v328_v9, 4  ;;  %v391_v20 = vrot.slane %v324_v12, 4  ;;  %v445_v61 = vld [vmem:[#allocation7] sm:$0xff] }
  0xa4   : > { %v325_v15 = vsel %vm1569_vm10, 0.0, %v1564_v11  ;;  %v329_v16 = vsel %vm1573_vm11, 0.0, %v1564_v11  ;;  %vm386_vm15 = vcmask 1047564   ;;  %vm415_vm0 = vcmask 920576   ;;  %v665_v8 = vld [vmem:[#allocation12] sm:$0xf] }
  0xa5   : > { %v377_v17 = vrot.slane %v329_v16, 4  ;;  %v392_v19 = vrot.slane %v325_v15, 4  ;;  %vm417_vm1 = vcmask 1044360   ;;  %vm402_vm3 = vcmask 1039364   ;;  %s903_s8 = sshll.u32 %s1313_s24, 7  ;;  %s290_s12 = scalar_lea.vmem [#allocation13], %s887_s26 }
  0xa6   : > { %365 = vrot.lane.b32.xlu1 %v325_v15, %s1254_s15  ;;  %vm404_vm7 = vcmask 1048572   ;;  %s768_s14 = sshll.u32 %s290_s12, 4  ;;  %s1673_s11 = scalar_lea.hbm %s1722_s5, %s903_s8  ;;  %s1675_s14 = int_to_ptr.vmem [resolvable:$true] %s768_s14 }
  0xa7   : > { %363 = vrot.lane.b32.xlu0 %v324_v12, %s1254_s15  ;;  %p1748_p5 = scmp.ne.s32.totalorder %s1732_s9, 0  ;;  %s1261_s24 = smov [#allocation13]  }
  0xa8   : > { %s1174_s26 = sshll.u32 %s1261_s24, 4  ;;  %s1175_s26 = int_to_ptr.vmem [resolvable:$false] %s1174_s26 }
  0xa9   : > { %p1177_p12 = scmp.lt.s32.totalorder %s1675_s14, %s1175_s26 }
  0xaa   : > { %380 = vrot.lane.b32.xlu1 %v377_v17, %s1255_s17 }
  0xab   : > { %336 = vrot.lane.b32.xlu0 %v329_v16, %s1253_s7 }
  0xae   : > { %408 = vrot.lane.b32.xlu1 %v329_v16, %s1256_s29 }
  0xaf   : > { %378 = vrot.lane.b32.xlu0 %v376_v18, %s1255_s17 }
  0xb2   : > { %393 = vrot.lane.b32.xlu1 %v391_v20, %s1257_s22 }
  0xb3   : > { %395 = vrot.lane.b32.xlu0 %v392_v19, %s1257_s22 }
  0xb6   : > { %419 = vrot.lane.b32.xlu1 %v347_v10, %s1258_s27 }
  0xb7   : > { %421 = vrot.lane.b32.xlu0 %v1544_v7, %s1258_s27 }
  0xba   : > { %432 = vrot.lane.b32.xlu1 %v324_v12, %s1259_s23 }
  0xbb   : > { %406 = vrot.lane.b32.xlu0 %v328_v9, %s1256_s29 }
  0xbf   : > { %434 = vrot.lane.b32.xlu0 %v325_v15, %s1259_s23 }
  0xc3   : > { %459 = vperm.xlu0 %1025, %v456_v22  }
 0x110   : > { %v351_v23 = vpop.permute.xlu1 %350 }
 0x114   : > { %v349_v25 = vpop.permute.xlu1 %348 }
 0x115   : > { %v335_v24 = vpop.permute.xlu0 %334  ;;  %v353_v26 = vsel %vm352_vm2, %v349_v25, %v351_v23  ;;  %357 = vst.msk [vmem:[#allocation2] sm:$0xf0] %vm356_vm13, %v349_v25  ;;  %vm428_vm13 = vcmask 916484  }
 0x116   : > { %343 = vst.msk [vmem:[#allocation2] sm:$0xf] %vm342_vm12, %v335_v24  ;;  %358 = vst [vmem:[#allocation2 + $0x8] sm:$0xf0] %v353_v26  ;;  %vm397_vm12 = vcmask 1039360  }
 0x118   : > { %v366_v28 = vpop.permute.xlu1 %365 }
 0x119   : > { %v364_v27 = vpop.permute.xlu0 %363 }
 0x11a   : > { %372 = vst.msk [vmem:[#allocation2 + $0x10] sm:$0xf] %vm371_vm14, %v364_v27  ;;  %v368_v29 = vsel %vm367_vm4, %v364_v27, %v366_v28  ;;  %vm430_vm14 = vcmask 1048452  }
 0x11b   : > { %373 = vst [vmem:[#allocation2 + $0x18] sm:$0xf] %v368_v29 }
 0x11c   : > { %v381_v32 = vpop.permute.xlu1 %380 }
 0x11d   : > { %v337_v30 = vpop.permute.xlu0 %336  ;;  %v446_v44 = vld [vmem:[#allocation2] sm:$0xff] }
 0x11e   : > { %v339_v31 = vsel %vm338_vm5, %v335_v24, %v337_v30 }
 0x11f   : > { %344 = vst [vmem:[#allocation2 + $0x8] sm:$0xf] %v339_v31 }
 0x120   : > { %v409_v35 = vpop.permute.xlu1 %408 }
 0x121   : > { %v379_v33 = vpop.permute.xlu0 %378  ;;  %416 = vst.msk [vmem:[#allocation2 + $0x38] sm:$0xf] %vm415_vm0, %v409_v35  ;;  %vm410_vm0 = vcmask 924672  }
 0x122   : > { %v383_v34 = vsel %vm382_vm9, %v379_v33, %v381_v32  ;;  %387 = vst.msk [vmem:[#allocation2 + $0x10] sm:$0xf0] %vm386_vm15, %v379_v33  ;;  %vm423_vm15 = vcmask 916480  }
 0x123   : > { %388 = vst [vmem:[#allocation2 + $0x18] sm:$0xf0] %v383_v34  ;;  %418 = vst.msk [vmem:[#allocation2 + $0x38] sm:$0xf] %vm417_vm1, %v1251_v1  ;;  %vm436_vm1 = vcmask 908288  }
 0x124   : > { %v394_v37 = vpop.permute.xlu1 %393 }
 0x125   : > { %v396_v36 = vpop.permute.xlu0 %395 }
 0x126   : > { %403 = vst.msk [vmem:[#allocation2 + $0x28] sm:$0xf0] %vm402_vm3, %v396_v36  ;;  %v398_v38 = vsel %vm397_vm12, %v394_v37, %v396_v36  ;;  %v447_v41 = vld [vmem:[#allocation2 + $0x8] sm:$0xff]  ;;  %vm441_vm3 = vcmask 904192  }
 0x127   : > { %405 = vst.msk [vmem:[#allocation2 + $0x28] sm:$0xf0] %vm404_vm7, %v1251_v1  ;;  %401 = vst [vmem:[#allocation2 + $0x20] sm:$0xf0] %v398_v38  ;;  %vm443_vm7 = vcmask 1044344  }
 0x128   : > { %v420_v45 = vpop.permute.xlu1 %419 }
 0x129   : > { %v422_v39 = vpop.permute.xlu0 %421  ;;  %v448_v40 = vld [vmem:[#allocation2 + $0x10] sm:$0xff] }
 0x12a   : > { %429 = vst.msk [vmem:[#allocation2 + $0x38] sm:$0xf0] %vm428_vm13, %v422_v39  ;;  %v449_v42 = vld [vmem:[#allocation2 + $0x18] sm:$0xff]  ;;  %v906_v46 = vpack.c.bf16 %v448_v40, %v446_v44  ;;  %v424_v47 = vsel %vm423_vm15, %v420_v45, %v422_v39  ;;  %vm466_vm13 = vcmask 1043456  }
 0x12b   : > { %431 = vst.msk [vmem:[#allocation2 + $0x38] sm:$0xf0] %vm430_vm14, %v1251_v1  ;;  %v904_v43 = vpack.c.bf16 %v449_v42, %v447_v41  ;;  %427 = vst [vmem:[#allocation2 + $0x30] sm:$0xf0] %v424_v47  ;;  %vm462_vm14 = vcmask 293888  }
 0x12c   : > { %v433_v50 = vpop.permute.xlu1 %432 }
 0x12d   : > { %905 = vmatprep.subr.bf16.mxu0 %v904_v43  ;;  %v407_v48 = vpop.permute.xlu0 %406 }
 0x12e   : > { %v411_v49 = vsel %vm410_vm0, %v407_v48, %v409_v35  ;;  %907 = vmatpush1.bf16.msra.mxu0 %v906_v46  ;;  %v451_v51 = vld [vmem:[#allocation2 + $0x28] sm:$0xff]  ;;  %v450_v56 = vld [vmem:[#allocation2 + $0x20] sm:$0xff] }
 0x12f   : > { %414 = vst [vmem:[#allocation2 + $0x30] sm:$0xf] %v411_v49 }
 0x131   : > { %v435_v52 = vpop.permute.xlu0 %434 }
 0x132   : > { %v437_v53 = vsel %vm436_vm1, %v433_v50, %v435_v52  ;;  %442 = vst.msk [vmem:[#allocation2 + $0x48] sm:$0xf] %vm441_vm3, %v435_v52  ;;  %v453_v54 = vld [vmem:[#allocation2 + $0x38] sm:$0xff]  ;;  %vm611_vm3 = vcmask 1048568  }
 0x133   : > { %440 = vst [vmem:[#allocation2 + $0x40] sm:$0xf] %v437_v53  ;;  %444 = vst.msk [vmem:[#allocation2 + $0x48] sm:$0xf] %vm443_vm7, %v1251_v1  ;;  %v908_v55 = vpack.c.bf16 %v453_v54, %v451_v51  ;;  %v646_v53 = vld [vmem:[#allocation10] sm:$0xf] }
 0x135   : > { %909 = vmatprep.subr.bf16.mxu0 %v908_v55 }
 0x136   : > { %v452_v57 = vld [vmem:[#allocation2 + $0x30] sm:$0xff] }
 0x137   : > { %v910_v58 = vpack.c.bf16 %v452_v57, %v450_v56 }
 0x139   : > { %911 = vmatpush1.bf16.msra.mxu0 %v910_v58 }
 0x13a   : > { %v455_v59 = vld [vmem:[#allocation2 + $0x48] sm:$0xf]  ;;  %v454_v60 = vld [vmem:[#allocation2 + $0x40] sm:$0xf] }
 0x13b   : > { %893 = vmatprep.subr.msk.mxu0 %vm466_vm13, %v455_v59 }
 0x13d   : > { %894 = vmatpush1.msk.msra.mxu0 %vm466_vm13, %v454_v60 }
 0x13e   : > { %895 = vmatmul.mubr.msk.f32.vlgmr.msra.gmra.mrb[0].mxu0 %vm462_vm14, %v445_v61 }
 0x142   : > { %v460_v62 = vpop.permute.xlu0 %459 }
 0x211   : > { %v539_v63 = vpop.f32.mrb[0].mxu0 }
 0x212   : > { %v540_v0 = vadd.f32 %v539_v63, %v460_v62  ;;  %v541_v2 = vpop.f32.mrb[1].mxu0 }
 0x213   : > { %v542_v3 = vadd.f32 %v541_v2, %v460_v62 }
 0x214   : > { %v1611_v4 = vmax.f32 %v540_v0, 0.0 }
 0x215   : > { %v1613_v6 = vmax.f32 %v542_v3, 0.0 }
 0x216   : > { %566 = vrot.lane.b32.xlu0 %v1611_v4, %s1252_s25  ;;  %v548_v9 = vsel %vm1540_vm6, 0.0, %v1611_v4  ;;  %v546_v10 = vsel %vm1546_vm8, 0.0, %v1611_v4  ;;  %vm573_vm6 = vcmask 1047680   ;;  %vm560_vm8 = vcmask 1047688  }
 0x217   : > { %553 = vrot.lane.b32.xlu1 %v548_v9, %s1253_s7  ;;  %v549_v12 = vsel %vm1573_vm11, 0.0, %v1613_v6  ;;  %v547_v5 = vsel %vm1569_vm10, 0.0, %v1613_v6  ;;  %vm586_vm10 = vcmask 1047672   ;;  %vm597_vm11 = vcmask 1047560  }
 0x21a   : > { %579 = vrot.lane.b32.xlu0 %v546_v10, %s1254_s15 }
 0x21b   : > { %568 = vrot.lane.b32.xlu1 %v1613_v6, %s1252_s25  ;;  %s754_s25 = scalar_lea.sflag [#allocation6], %s1511_s13 }
 0x21e   : > { %590 = vrot.lane.b32.xlu0 %v548_v9, %s1255_s17 }
 0x21f   : > { %555 = vrot.lane.b32.xlu1 %v549_v12, %s1253_s7  ;;  %s1170_s7 = scalar_lea.vmem %s1675_s14, 128 }
 0x220   : > { %p1171_p6 = scmp.ne.s32.totalorder %s1675_s14, %s1170_s7 }
 0x222   : > { %604 = vrot.lane.b32.xlu0 %v547_v5, %s1257_s22  ;;  %p1172_p7 = pnand %p1171_p6, %p1748_p5 }
 0x223   : > { %581 = vrot.lane.b32.xlu1 %v547_v5, %s1254_s15  ;;  %s1176_s15 = scalar_lea.vmem %s1175_s26, 256 }
 0x224   : > { %p1173_p9 = pneg %p1172_p7  ;;  %p1178_p3 = scmp.lt.s32.totalorder %s1176_s15, %s1170_s7 }
 0x226   : > { %615 = vrot.lane.b32.xlu0 %v549_v12, %s1256_s29  ;;  %p1179_p13 = por %p1178_p3, %p1177_p12 }
 0x227   : > { %592 = vrot.lane.b32.xlu1 %v549_v12, %s1255_s17 }
 0x228   : > { %p1180_p0 = pnand %p1179_p13, %p1173_p9 }
 0x22a   : > { %613 = vrot.lane.b32.xlu0 %v548_v9, %s1256_s29 }
 0x22b   : > { %602 = vrot.lane.b32.xlu1 %v546_v10, %s1257_s22 }
 0x22e   : > { %637 = vrot.lane.b32.xlu0 %v547_v5, %s1259_s23 }
 0x22f   : > { %626 = vrot.lane.b32.xlu1 %v1613_v6, %s1258_s27 }
 0x232   : > { %668 = vperm.xlu0 %1025, %v665_v8  }
 0x233   : > { %624 = vrot.lane.b32.xlu1 %v1611_v4, %s1258_s27 }
 0x237   : > { %635 = vrot.lane.b32.xlu1 %v546_v10, %s1259_s23 }
 0x288   : > { %v567_v13 = vpop.permute.xlu0 %566 }
 0x289   : > { %574 = vst.msk [vmem:[#allocation3 + $0x10] sm:$0xff] %vm573_vm6, %v567_v13  ;;  %v554_v14 = vpop.permute.xlu1 %553 }
 0x28a   : > { %561 = vst.msk [vmem:[#allocation3] sm:$0xff] %vm560_vm8, %v554_v14 }
 0x28c   : > { %v580_v15 = vpop.permute.xlu0 %579 }
 0x28d   : > { %587 = vst.msk [vmem:[#allocation3 + $0x20] sm:$0xff] %vm586_vm10, %v580_v15  ;;  %v569_v16 = vpop.permute.xlu1 %568 }
 0x28e   : > { %v570_v17 = vsel %vm352_vm2, %v567_v13, %v569_v16  ;;  %vm622_vm2 = vcmask 1048456  }
 0x290   : > { %v591_v18 = vpop.permute.xlu0 %590  ;;  %v649_v21 = vld [vmem:[#allocation3 + $0x10] sm:$0xff] }
 0x291   : > { %598 = vst.msk [vmem:[#allocation3 + $0x30] sm:$0xff] %vm597_vm11, %v591_v18  ;;  %v556_v19 = vpop.permute.xlu1 %555  ;;  %v647_v20 = vld [vmem:[#allocation3] sm:$0xff] }
 0x292   : > { %v557_v22 = vsel %vm338_vm5, %v554_v14, %v556_v19  ;;  %v914_v25 = vpack.c.bf16 %v649_v21, %v647_v20  ;;  %vm633_vm5 = vcmask 1048448  }
 0x293   : > { %v912_v23 = vpack.c.bf16 %v570_v17, %v557_v22 }
 0x294   : > { %v605_v24 = vpop.permute.xlu0 %604  ;;  %v651_v33 = vld [vmem:[#allocation3 + $0x20] sm:$0xff] }
 0x295   : > { %610 = vst.msk [vmem:[#allocation3 + $0x58] sm:$0xff] %vm397_vm12, %v605_v24  ;;  %v582_v26 = vpop.permute.xlu1 %581  ;;  %913 = vmatprep.subr.bf16.mxu1 %v912_v23 }
 0x296   : > { %612 = vst.msk [vmem:[#allocation3 + $0x58] sm:$0xff] %vm611_vm3, %v1251_v1  ;;  %v583_v27 = vsel %vm367_vm4, %v580_v15, %v582_v26  ;;  %915 = vmatpush1.bf16.msra.mxu1 %v914_v25  ;;  %vm644_vm4 = vcmask 1048440  }
 0x298   : > { %v616_v28 = vpop.permute.xlu0 %615  ;;  %v653_v30 = vld [vmem:[#allocation3 + $0x30] sm:$0xff] }
 0x299   : > { %621 = vst.msk [vmem:[#allocation3 + $0x68] sm:$0xff] %vm410_vm0, %v616_v28  ;;  %v593_v29 = vpop.permute.xlu1 %592  ;;  %v918_v35 = vpack.c.bf16 %v653_v30, %v651_v33 }
 0x29a   : > { %623 = vst.msk [vmem:[#allocation3 + $0x68] sm:$0xff] %vm622_vm2, %v1251_v1  ;;  %v594_v31 = vsel %vm382_vm9, %v591_v18, %v593_v29  ;;  %vm671_vm9 = vcmask 588800  }
 0x29b   : > { %v916_v32 = vpack.c.bf16 %v594_v31, %v583_v27 }
 0x29c   : > { %v614_v34 = vpop.permute.xlu0 %613 }
 0x29d   : > { %v617_v36 = vsel %vm410_vm0, %v614_v34, %v616_v28  ;;  %v603_v37 = vpop.permute.xlu1 %602  ;;  %917 = vmatprep.subr.bf16.mxu1 %v916_v32  ;;  %v658_v38 = vld [vmem:[#allocation3 + $0x58] sm:$0xff] }
 0x29e   : > { %v606_v39 = vsel %vm397_vm12, %v603_v37, %v605_v24  ;;  %919 = vmatpush1.bf16.msra.mxu1 %v918_v35  ;;  %v920_v40 = vpack.c.bf16 %v658_v38, %v1613_v6 }
 0x29f   : > { %v922_v41 = vpack.c.bf16 %v606_v39, %v1611_v4 }
 0x2a0   : > { %v638_v42 = vpop.permute.xlu0 %637  ;;  %921 = vmatprep.subr.bf16.mxu1 %v920_v40 }
 0x2a1   : > { %643 = vst.msk [vmem:[#allocation3 + $0x88] sm:$0xff] %vm436_vm1, %v638_v42  ;;  %v627_v43 = vpop.permute.xlu1 %626  ;;  %v660_v46 = vld [vmem:[#allocation3 + $0x68] sm:$0xff] }
 0x2a2   : > { %645 = vst.msk [vmem:[#allocation3 + $0x88] sm:$0xff] %vm644_vm4, %v1251_v1  ;;  %923 = vmatpush1.bf16.msra.mxu1 %v922_v41 }
 0x2a3   : > { %632 = vst.msk [vmem:[#allocation3 + $0x78] sm:$0xff] %vm423_vm15, %v627_v43 }
 0x2a4   : > { %634 = vst.msk [vmem:[#allocation3 + $0x78] sm:$0xff] %vm633_vm5, %v1251_v1 }
 0x2a5   : > { %v625_v44 = vpop.permute.xlu1 %624 }
 0x2a6   : > { %v628_v45 = vsel %vm423_vm15, %v625_v44, %v627_v43 }
 0x2a7   : > { %v926_v51 = vpack.c.bf16 %v628_v45, %v617_v36 }
 0x2a9   : > { %v636_v47 = vpop.permute.xlu1 %635  ;;  %v664_v52 = vld [vmem:[#allocation3 + $0x88] sm:$0xff] }
 0x2aa   : > { %v639_v48 = vsel %vm436_vm1, %v636_v47, %v638_v42 }
 0x2ab   : > { %v662_v49 = vld [vmem:[#allocation3 + $0x78] sm:$0xff] }
 0x2ac   : > { %v924_v50 = vpack.c.bf16 %v662_v49, %v660_v46 }
 0x2ae   : > { %925 = vmatprep.subr.bf16.mxu1 %v924_v50 }
 0x2af   : > { %927 = vmatpush1.bf16.msra.mxu1 %v926_v51 }
 0x2b0   : > { %691 = vmatprep.subr.mxu1 %v664_v52 }
 0x2b1   : > { %v669_v1 = vpop.permute.xlu0 %668 }
 0x2b3   : > { %692 = vmatpush1.msra.mxu1 %v639_v48 }
 0x2b4   : > { %896 = vmatmul.mubr.msk.f32.vlgmr.msra.gmra.mrb[0].mxu1 %vm671_vm9, %v646_v53 }
 0x387   : > { %v741_v54 = vpop.f32.mrb[0].mxu1 }
 0x388   : > { %v742_v55 = vadd.f32 %v741_v54, %v669_v1  ;;  %v743_v56 = vpop.f32.mrb[1].mxu1 }
 0x389   : > { %v744_v57 = vadd.f32 %v743_v56, %v669_v1 }
 0x38a   : > { %v746_v58 = vadd.f32 %v742_v55, %v1544_v7 }
 0x38b   : > { %v747_v59 = vadd.f32 %v744_v57, %v1564_v11 }
 0x38d   : > { %v750_v60 = vcombine.low %v746_v58, %v747_v59 }
 0x38f   : > { %752 = vst [vmem:[%s290_s12] sm:$0xff] %v750_v60 }
 0x390   : > { %1183 = shalt.err (!%p1180_p0)
}
 0x391   : > { %s1184_s13 = scalar_lea.hbm %s1673_s11, 128  ;;  %s1188_s22 = scalar_lea.hbm %s1722_s5, 256 }
 0x392   : > { %p1185_p2 = scmp.ne.s32.totalorder %s1673_s11, %s1184_s13  ;;  %p1189_p4 = scmp.lt.u32.totalorder %s1673_s11, %s1722_s5 }
 0x393   : > { %p1190_p11 = scmp.lt.u32.totalorder %s1188_s22, %s1184_s13  ;;  %p1192_p6 = scmp.lt.u32.totalorder %s1184_s13, %s1673_s11 }
 0x394   : > { %p1186_p8 = pnand %p1185_p2, %p1748_p5 }
 0x395   : > { %p1191_p1 = por %p1190_p11, %p1189_p4 }
 0x396   : > { %p1187_p10 = pneg %p1186_p8 }
 0x397   : > { %p1193_p7 = por %p1192_p6, %p1191_p1 }
 0x399   : > { %p1194_p9 = pnand %p1193_p7, %p1187_p10 }
 0x39b   : > { %1197 = shalt.err (!%p1194_p9)
}
 0x39c   : > { %946 = dma.vmem_to_hbm [thread:$0]  (%p1748_p5), %s1675_s14, 128, %s1673_s11, %s754_s25  }
 0x39d PF: > { %s780_s8 = sand.u32 1, %s1232_s18   ;;  %p1749_p12 = scmp.ne.s32.totalorder %s1733_s10, 0 }
 0x39e   : > { %p1750_p3 = scmp.ge.s32.totalorder %s1244_s21, 2  ;;  %s781_s12 = scalar_lea.sflag [#allocation6], %s780_s8 }
 0x3a0   : > { %p966_p13 = pnand %p1750_p3, %p1749_p12 }
 0x3a2   : > { %1227 = dma.done.wait (!%p966_p13), %s781_s12, 128  }
 0x3a3   : > { %1229 = vsyncadd (!%p966_p13), %s781_s12, 4294967168  ;;  %p20_p0 = scmp.ge.s32.totalorder %s1435_s30, 4   ;;  %s1751_s18 = smov %s1236_s19 }
 0x3a4   : > { %s1752_s19 = smov %s1240_s20  ;;  %s1753_s20 = smov %s1446_s6 }
 0x3a5   : > { %s1754_s21 = smov %s1435_s30  ;;  %22 = sbr.rel (!%p20_p0) target bundleno = 7 (0x7), region = 101 }
 0x3ac   :  { %786 = vsyncpa [#allocation5], 1 }
 0x3ad   :  { %788 = vsyncpa [#allocation5 + $0x1], 1 }
 0x3ae   :  { %789 = vsyncpa [#allocation8], 1 }
 0x3af   :  { %790 = vsyncpa [#allocation11], 1 }
 0x3b0   :  { %791 = vsyncpa [#allocation6], 1 }
 0x3b1   :  { %793 = vsyncpa [#allocation6 + $0x1], 1 }

</bundles_post_ra>
